<compile_context>
chip_gen: v7x
topology: tpu7x:2x2x1
jax: 0.10.0
libtpu: 0.0.40
codegen_flags: <defaults>
</compile_context>

<pallas_src>
import math

import jax
import jax.numpy as jnp
from jax.experimental import pallas as pl
from jax.experimental.pallas import tpu as pltpu


def receiver_gs_kernel(inp_ref, w_ref, b_ref, x_ref, out_ref):
    """One grid step = TB batch elements (TB*N candidate rows).

    inp_ref : (TB*N, F)   flattened candidate rows of this batch tile
    w_ref   : (F, H)      fc1 weight (shared, resident across the grid)
    b_ref   : (1, H)      fc1 bias   (shared, resident across the grid)
    x_ref   : (TB, H)     per-batch message embedding
    out_ref : (1, TB*N)   lane-dense flattened energies for this tile
    """
    tb, h = x_ref.shape
    rows = inp_ref.shape[0]
    n = rows // tb

    # fc1 + tanh: a single fused MXU matmul over all TB*N rows of the tile.
    emb = jnp.tanh(
        jnp.dot(inp_ref[...], w_ref[...], preferred_element_type=jnp.float32)
        + b_ref[...]
    )  # (TB*N, H) f32

    # energies[b, n] = emb[b, n, :] . x[b, :]
    # VPU multiply + lane (XLU) reduce; rides in slack of this HBM-bound kernel.
    emb3 = emb.reshape(tb, n, h)            # sublane regroup only (last dim kept)
    xb = x_ref[...].reshape(tb, 1, h)       # broadcast over the N candidates
    energies = jnp.sum(emb3 * xb, axis=-1)  # (TB, N)

    # Lane-dense store: one contiguous (1, TB*N) row per grid step.
    out_ref[...] = energies.reshape(1, rows)


def _choose_batch_tile(B, N, target_rows=1024):
    """Pick TB (batch elems per grid step) and padded batch size.

    Either a single tile covers the whole (small) batch (full-extent blocks), or
    TB*N is a multiple of 128 (lane-dense flattened output store) and TB is a
    multiple of 8 (sublane-aligned (TB, H) x-block).
    """
    if B * N <= max(target_rows, 128):
        return B, B                                    # one grid step, full extent
    step = 128 // math.gcd(N, 128)                     # TB % step == 0 -> TB*N % 128 == 0
    step = step * 8 // math.gcd(step, 8)               # also keep TB % 8 == 0
    tb = max(step, (target_rows // (step * N)) * step)
    b_pad = ((B + tb - 1) // tb) * tb
    return tb, b_pad


def receiver_gs_forward(x, _input, W, bias, *, target_rows=1024):
    """ReceiverGS forward: tanh(_input @ W + bias) @ x[..., None].

    x      : (B, H)      message embedding
    _input : (B, N, F)   candidate objects
    W      : (F, H)      fc1 weight (transposed vs torch's (out, in))
    bias   : (H,)        fc1 bias
    returns: (B, N)      energies
    """
    B, N, F = _input.shape
    H = W.shape[1]

    TB, B_pad = _choose_batch_tile(B, N, target_rows)
    if B_pad != B:  # zero-pad the batch so the grid tiles evenly; sliced off below
        pad = B_pad - B
        _input = jnp.concatenate([_input, jnp.zeros((pad, N, F), _input.dtype)], 0)
        x = jnp.concatenate([x, jnp.zeros((pad, H), x.dtype)], 0)

    # Free row-major reshapes done in HBM (outside the kernel).
    inp_flat = _input.reshape(B_pad * N, F)
    bias2d = bias.reshape(1, H)

    grid = B_pad // TB
    rows_per_tile = TB * N

    # NOTE: kernel is HBM-bandwidth bound; if accuracy allows, cast inp_flat / W
    # to bfloat16 here (dot keeps preferred_element_type=f32) for ~2x less
    # input traffic. Kept f32 so the exact reference check below passes.

    out = pl.pallas_call(
        receiver_gs_kernel,
        out_shape=jax.ShapeDtypeStruct((grid, rows_per_tile), jnp.float32),
        grid_spec=pltpu.PrefetchScalarGridSpec(
            num_scalar_prefetch=0,
            grid=(grid,),
            in_specs=[
                pl.BlockSpec((rows_per_tile, F), lambda b: (b, 0)),  # input rows
                pl.BlockSpec((F, H), lambda b: (0, 0)),              # W (resident)
                pl.BlockSpec((1, H), lambda b: (0, 0)),              # bias (resident)
                pl.BlockSpec((TB, H), lambda b: (b, 0)),             # x tile
            ],
            out_specs=pl.BlockSpec((1, rows_per_tile), lambda b: (b, 0)),
        ),
        compiler_params=pltpu.CompilerParams(
            dimension_semantics=("parallel",),  # batch tiles shard across TCs (v7x)
        ),
    )(inp_flat, W, bias2d, x)

    # (grid, TB*N) -> (B_pad, N) is a free row-major reshape; drop batch padding.
    # TODO(synk): torch's .squeeze() also drops singleton B / N dims; we always return (B, N).
    return out.reshape(B_pad, N)[:B]


def receiver_gs_reference(x, _input, W, bias):
    emb = jnp.tanh(jnp.einsum("bnf,fh->bnh", _input, W) + bias)
    return jnp.einsum("bnh,bh->bn", emb, x)


if __name__ == "__main__":
    # Small shapes consistent with the module.
    B = 2          # batch
    N_OBJ = 8      # number of candidate objects
    N_FEAT = 16    # n_features
    H = 32         # linear_units (matches x's last dim)

    key = jax.random.PRNGKey(0)
    k_inp, k_x, k_w, k_b, k_inp2, k_x2 = jax.random.split(key, 6)

    _input = jax.random.normal(k_inp, (B, N_OBJ, N_FEAT), dtype=jnp.float32)
    x = jax.random.normal(k_x, (B, H), dtype=jnp.float32)

    # Deterministic synthetic params (mirrors nn.Linear(n_features, linear_units)).
    W = jax.random.normal(k_w, (N_FEAT, H), dtype=jnp.float32) * (1.0 / jnp.sqrt(N_FEAT))
    bias = jax.random.normal(k_b, (H,), dtype=jnp.float32) * 0.01

    out = jax.block_until_ready(receiver_gs_forward(x, _input, W, bias))
    ref = receiver_gs_reference(x, _input, W, bias)
    assert out.shape == (B, N_OBJ)
    assert jnp.allclose(out, ref, atol=1e-5, rtol=1e-5)

    # Also exercise the batch-tiled path (grid > 1, padded batch, lane-dense slabs).
    B2 = 300
    _input2 = jax.random.normal(k_inp2, (B2, N_OBJ, N_FEAT), dtype=jnp.float32)
    x2 = jax.random.normal(k_x2, (B2, H), dtype=jnp.float32)
    out2 = jax.block_until_ready(receiver_gs_forward(x2, _input2, W, bias))
    ref2 = receiver_gs_reference(x2, _input2, W, bias)
    assert out2.shape == (B2, N_OBJ)
    assert jnp.allclose(out2, ref2, atol=1e-4, rtol=1e-4)

    print("KERNEL_OK")
</pallas_src>

<mosaic_0001>
module attributes {stable_mosaic.version = 11 : i64} {
  func.func @receiver_gs_kernel(%arg0: i32, %arg1: memref<16x16xf32, #tpu.memory_space<vmem>>, %arg2: memref<16x32xf32, #tpu.memory_space<vmem>>, %arg3: memref<1x32xf32, #tpu.memory_space<vmem>>, %arg4: memref<2x32xf32, #tpu.memory_space<vmem>>, %arg5: memref<1x16xf32, #tpu.memory_space<vmem>>) attributes {dimension_semantics = [#tpu.dimension_semantics<parallel>], iteration_bounds = array<i64: 1>, scalar_prefetch = 0 : i64, scratch_operands = 0 : i64, tpu.core_type = #tpu.core_type<tc>, window_params = [{transform_indices = @transform_0, window_bounds = array<i64: 16, 16>}, {pipeline_mode = #tpu.pipeline_mode<synchronous>, transform_indices = @transform_1, window_bounds = array<i64: 16, 32>}, {pipeline_mode = #tpu.pipeline_mode<synchronous>, transform_indices = @transform_2, window_bounds = array<i64: 1, 32>}, {transform_indices = @transform_3, window_bounds = array<i64: 2, 32>}, {transform_indices = @transform_4, window_bounds = array<i64: 1, 16>}]} {
    %c0 = arith.constant 0 : index
    %c0_0 = arith.constant 0 : index
    %0 = vector.load %arg1[%c0, %c0_0] : memref<16x16xf32, #tpu.memory_space<vmem>>, vector<16x16xf32>
    %c0_1 = arith.constant 0 : index
    %c0_2 = arith.constant 0 : index
    %1 = vector.load %arg2[%c0_1, %c0_2] : memref<16x32xf32, #tpu.memory_space<vmem>>, vector<16x32xf32>
    %cst = arith.constant dense<0.000000e+00> : vector<16x32xf32>
    %2 = tpu.matmul %0, %1, %cst {dimension_numbers = #tpu.dot_dimension_numbers<[1], [0], [0], [1], [0, 0, 1, 1], [], []>} : vector<16x16xf32>, vector<16x32xf32>, vector<16x32xf32> -> vector<16x32xf32>
    %c0_3 = arith.constant 0 : index
    %c0_4 = arith.constant 0 : index
    %3 = vector.load %arg3[%c0_3, %c0_4] : memref<1x32xf32, #tpu.memory_space<vmem>>, vector<1x32xf32>
    %4 = vector.broadcast %3 : vector<1x32xf32> to vector<16x32xf32>
    %5 = arith.addf %2, %4 : vector<16x32xf32>
    %6 = math.tanh %5 : vector<16x32xf32>
    %7 = vector.shape_cast %6 : vector<16x32xf32> to vector<2x8x32xf32>
    %c0_5 = arith.constant 0 : index
    %c0_6 = arith.constant 0 : index
    %8 = vector.load %arg4[%c0_5, %c0_6] : memref<2x32xf32, #tpu.memory_space<vmem>>, vector<2x32xf32>
    %9 = vector.shape_cast %8 : vector<2x32xf32> to vector<2x1x32xf32>
    %10 = vector.broadcast %9 : vector<2x1x32xf32> to vector<2x8x32xf32>
    %11 = arith.mulf %7, %10 : vector<2x8x32xf32>
    %cst_7 = arith.constant dense<0.000000e+00> : vector<2x8xf32>
    %12 = vector.multi_reduction <add>, %11, %cst_7 [2] : vector<2x8x32xf32> to vector<2x8xf32>
    %13 = vector.shape_cast %12 : vector<2x8xf32> to vector<1x16xf32>
    %c0_8 = arith.constant 0 : index
    %c0_9 = arith.constant 0 : index
    %14 = vector.load %arg5[%c0_8, %c0_9] : memref<1x16xf32, #tpu.memory_space<vmem>>, vector<1x16xf32>
    tpu.vector_store %arg5[%c0_8, %c0_9], %13 {strides = array<i32>} : memref<1x16xf32, #tpu.memory_space<vmem>>, vector<1x16xf32>,
    return
  }
  func.func @transform_0(%arg0: i32) -> (i32, i32) {
    %c0_i32 = arith.constant 0 : i32
    %c0_i32_0 = arith.constant 0 : i32
    return %arg0, %c0_i32 : i32, i32
  }
  func.func @transform_1(%arg0: i32) -> (i32, i32) {
    %c0_i32 = arith.constant 0 : i32
    %c0_i32_0 = arith.constant 0 : i32
    %c0_i32_1 = arith.constant 0 : i32
    return %c0_i32, %c0_i32_0 : i32, i32
  }
  func.func @transform_2(%arg0: i32) -> (i32, i32) {
    %c0_i32 = arith.constant 0 : i32
    %c0_i32_0 = arith.constant 0 : i32
    %c0_i32_1 = arith.constant 0 : i32
    return %c0_i32, %c0_i32_0 : i32, i32
  }
  func.func @transform_3(%arg0: i32) -> (i32, i32) {
    %c0_i32 = arith.constant 0 : i32
    %c0_i32_0 = arith.constant 0 : i32
    return %arg0, %c0_i32 : i32, i32
  }
  func.func @transform_4(%arg0: i32) -> (i32, i32) {
    %c0_i32 = arith.constant 0 : i32
    %c0_i32_0 = arith.constant 0 : i32
    return %arg0, %c0_i32 : i32, i32
  }
}

</mosaic_0001>

<bundles_post_ra>
// kernel: tpu_custom_call.1
= control target key start
LH: loop header
LB: loop body
LE: loop exit
PB: predicated region body
PF: predicated region fallthrough
CT: control target
= control target key end

     0   :  { %9 = vsyncpa [#allocation3], 0  ;;  %s392_s0 = inlined_call_operand.hbm [shape: f32[16,16], index: 0, kind: input, shape index: {}]   ;;  %s393_s1 = inlined_call_operand.hbm [shape: f32[16,32], index: 1, kind: input, shape index: {}]   ;;  %s394_s2 = inlined_call_operand.vmem [shape: f32[1,32], index: 2, kind: input, shape index: {}]   ;;  %s395_s3 = inlined_call_operand.vmem [shape: f32[2,32], index: 3, kind: input, shape index: {}]   ;;  %s396_s4 = inlined_call_operand.hbm [shape: f32[1,16], index: 4, kind: output, shape index: {}]  }
   0x1   :  { %10 = vsyncpa [#allocation6], 0 }
   0x2   :  { %11 = vsyncpa [#allocation4], 0  ;;  %s319_s15 = smov [#allocation2]   ;;  %s247_s19 = scalar_lea.hbm %s392_s0, 256 }
   0x3   :  { %s17_s16 = sshll.u32 %s319_s15, 4  ;;  %p248_p0 = scmp.ne.s32.totalorder %s392_s0, %s247_s19  ;;  %s18_s16 = int_to_ptr.vmem [resolvable:$true] %s17_s16 }
   0x4   :  { %p251_p1 = scmp.lt.u32.totalorder %s247_s19, %s392_s0 }
   0x6   :  { %p253_p2 = pnand %p251_p1, %p248_p0 }
   0x8   :  { %256 = shalt.err (!%p253_p2)
}
   0x9   :  { %s257_s24 = scalar_lea.vmem %s18_s16, 256  ;;  %p262_p4 = scmp.lt.s32.totalorder %s18_s16, %s18_s16 }
   0xa   :  { %p258_p3 = scmp.ne.s32.totalorder %s18_s16, %s257_s24  ;;  %p263_p5 = scmp.lt.s32.totalorder %s257_s24, %s257_s24 }
   0xc   :  { %p264_p6 = por %p263_p5, %p262_p4 }
   0xe   :  { %p265_p7 = pnand %p264_p6, %p258_p3 }
  0x10   :  { %268 = shalt.err (!%p265_p7)
}
  0x11   :  { %s320_s25 = smov 128   ;;  %s321_s26 = smov 8  }
  0x12   :  { %23 = dma.hbm_to_vmem [thread:$0]  %s392_s0, 256, %s18_s16, [#allocation3], %s320_s25, %s320_s25, %s321_s26  }
  0x13   :  { %s322_s29 = smov [#allocation5]   ;;  %s269_s7 = scalar_lea.hbm %s393_s1, 256 }
  0x14   :  { %s29_s30 = sshll.u32 %s322_s29, 4  ;;  %p270_p8 = scmp.ne.s32.totalorder %s393_s1, %s269_s7  ;;  %s30_s30 = int_to_ptr.vmem [resolvable:$true] %s29_s30 }
  0x15   :  { %p273_p9 = scmp.lt.u32.totalorder %s269_s7, %s393_s1 }
  0x17   :  { %p275_p10 = pnand %p273_p9, %p270_p8 }
  0x19   :  { %278 = shalt.err (!%p275_p10)
}
  0x1a   :  { %s279_s12 = scalar_lea.vmem %s30_s30, 256  ;;  %p284_p12 = scmp.lt.s32.totalorder %s30_s30, %s30_s30 }
  0x1b   :  { %p280_p11 = scmp.ne.s32.totalorder %s30_s30, %s279_s12  ;;  %p285_p13 = scmp.lt.s32.totalorder %s279_s12, %s279_s12 }
  0x1d   :  { %p286_p0 = por %p285_p13, %p284_p12 }
  0x1f   :  { %p287_p1 = pnand %p286_p0, %p280_p11 }
  0x21   :  { %290 = shalt.err (!%p287_p1)
}
  0x22   :  { %35 = dma.hbm_to_vmem [thread:$0]  %s393_s1, 256, %s30_s30, [#allocation6], %s320_s25, %s320_s25, %s321_s26  }
  0x23   :  { %313 = dma.done.wait [#allocation3], 256  }
  0x24   :  { %314 = vsyncadd [#allocation3], 4294967040 }
  0x25   :  { %315 = dma.done.wait [#allocation6], 256  }
  0x26   :  { %316 = vsyncadd [#allocation6], 4294967040  ;;  %vm57_vm0 = vcmask 130048   ;;  %v48_v0 = vld [vmem:[#allocation5] sm:$0xff]  ;;  %v49_v1 = vld [vmem:[#allocation5 + $0x8] sm:$0xff]  ;;  %v154_v7 = vlaneseq  ;;  %vm177_vm1 = vcmask 261120  }
  0x27   :  { %v46_v2 = vld [vmem:[#allocation2] sm:$0xff]  ;;  %v233_v3 = vpack.c.bf16 %v49_v1, %v48_v0  ;;  %v47_v4 = vld [vmem:[#allocation2 + $0x8] sm:$0xff]  ;;  %v323_v5 = vmov 1966171168   ;;  %vm197_vm2 = vcmask 130112   ;;  %vm200_vm3 = vcmask 122880  }
  0x28   :  { %230 = vmatprep.mubr.msk.f32.mxu0 %vm57_vm0, %v46_v2  ;;  %v152_v6 = vunpack.c.l.s4 %v323_v5  ;;  %v218_v8 = vld [vmem:[%s394_s2] ss:$0 sm:$0xff]  ;;  %v155_v10 = vshrl.u32 %v154_v7, 7  ;;  %v187_v29 = vand.u32 127, %v154_v7  ;;  %s324_s2 = smov [#allocation7]  }
  0x29   :  { %234 = vmatprep.subr.bf16.mxu0 %v233_v3  ;;  %v221_v15 = vld.sshfl [vmem:[%s395_s3] sm:$0x11 pattern:$0x75316420]  ;;  %s208_s3 = sshll.u32 %s324_s2, 4  ;;  %s209_s3 = int_to_ptr.vmem [resolvable:$true] %s208_s3 }
  0x2a   :  { %236 = vmatpush3.bf16.msra.mxu0 %v233_v3  ;;  %v153_v9 = vunpack.c.0.s8 %v152_v6  ;;  %v150_v17 = vcombine.high %v221_v15, %v221_v15  ;;  %v167_v19 = vsub.s32 0, %v155_v10  ;;  %v192_v30 = vadd.s32 4294967288, %v187_v29  ;;  %s291_s17 = scalar_lea.vmem %s209_s3, 16  ;;  %s295_s18 = scalar_lea.vmem %s209_s3, 32 }
  0x2b   :  { %v190_v32 = vsub.s32 %v187_v29, %v155_v10  ;;  %p292_p2 = scmp.ne.s32.totalorder %s209_s3, %s291_s17  ;;  %p296_p3 = scmp.lt.s32.totalorder %s209_s3, %s209_s3 }
  0x2c   :  { %v156_v16 = vsub.s32 %v153_v9, %v155_v10  ;;  %v195_v33 = vsub.s32 %v192_v30, %v155_v10  ;;  %p297_p4 = scmp.lt.s32.totalorder %s295_s18, %s291_s17 }
  0x2d   :  { %231 = vmatmul.mubr.msk.f32.vlgmr.msra.gmra.mrb[0].mxu0 %vm57_vm0, %v47_v4 }
  0x2e   :  { %v157_v18 = vrot.slane %v221_v15, %v156_v16  ;;  %v164_v20 = vrot.slane %v150_v17, %v156_v16  ;;  %p298_p5 = por %p297_p4, %p296_p3 }
  0x30   :  { %v168_v21 = vrot.slane %v157_v18, %v167_v19  ;;  %v172_v23 = vrot.slane %v164_v20, %v167_v19  ;;  %p299_p6 = pnand %p298_p5, %p292_p2 }
 0x100   :  { %v232_v11 = vpop.f32.mrb[0].mxu0 }
 0x101   :  { %v136_v12 = vadd.f32 %v232_v11, %v218_v8  ;;  %v130_v13 = vpop.f32.mrb[1].mxu0 }
 0x102   :  { %v131_v14 = vadd.f32 %v218_v8, %v130_v13 }
 0x103   :  { %243 = vtanh.f32 %v136_v12 }
 0x104   :  { %245 = vtanh.f32 %v131_v14 }
 0x10d   :  { %v244_v22 = vpop.eup %243 }
 0x10e   :  { %v246_v24 = vpop.eup %245  ;;  %v176_v27 = vmul.f32 %v244_v22, %v172_v23 }
 0x10f   :  { %v175_v25 = vmul.f32 %v246_v24, %v168_v21 }
 0x110   :  { %v181_v28 = vsel %vm177_vm1, %v176_v27, 0.0 }
 0x111   :  { %v178_v26 = vsel %vm177_vm1, %v175_v25, 0.0 }
 0x112   :  { %179 = vadd.xlane.f32.xlu0 %v178_v26 }
 0x116   :  { %182 = vadd.xlane.f32.xlu0 %v181_v28 }
 0x19f   :  { %v180_v31 = vpop.xlane.xlu0 %179 }
 0x1a0   :  { %v191_v35 = vrot.slane %v180_v31, %v190_v32 }
 0x1a3   :  { %v183_v34 = vpop.xlane.xlu0 %182 }
 0x1a4   :  { %v196_v36 = vrot.slane %v183_v34, %v195_v33 }
 0x1a6   :  { %v198_v37 = vsel %vm197_vm2, %v196_v36, %v191_v35 }
 0x1a7   :  { %201 = vst.msk [vmem:[#allocation7] sm:$0x1] %vm200_vm3, %v198_v37 }
 0x1a8   :  { %302 = shalt.err (!%p299_p6)
}
 0x1a9   :  { %s303_s21 = scalar_lea.hbm %s396_s4, 16 }
 0x1aa   :  { %p304_p7 = scmp.ne.s32.totalorder %s396_s4, %s303_s21  ;;  %p307_p8 = scmp.lt.u32.totalorder %s303_s21, %s396_s4 }
 0x1ac   :  { %p309_p9 = pnand %p307_p8, %p304_p7 }
 0x1ae   :  { %312 = shalt.err (!%p309_p9)
}
 0x1af   :  { %211 = dma.vmem_to_hbm [thread:$0]  %s209_s3, 16, %s396_s4, [#allocation4]  }
 0x1b0   :  { %317 = dma.done.wait [#allocation4], 16  }
 0x1b1   :  { %318 = vsyncadd [#allocation4], 4294967280 }
 0x1b2   :  { %215 = vsyncpa [#allocation3], 1 }
 0x1b3   :  { %216 = vsyncpa [#allocation6], 1 }
 0x1b4   :  { %217 = vsyncpa [#allocation4], 1 }

</bundles_post_ra>
